<compile_context>
chip_gen: v6e
topology: v6e:2x2x1
jax: 0.10.0
libtpu: 0.0.40
codegen_flags: <defaults>
</compile_context>

<pallas_src>
import math
from functools import partial

import jax
import jax.numpy as jnp
from jax import lax
from jax.experimental import pallas as pl
from jax.experimental.pallas import tpu as pltpu


def _attention_layer_kernel(q_in_ref, k_in_ref, v_in_ref,
                            wq_ref, bq_ref, wk_ref, bk_ref,
                            wv_ref, bv_ref, wo_ref, bo_ref,
                            out_ref,
                            k_proj_ref, v_proj_ref, q_proj_ref, heads_ref,
                            *, n_heads, d_keys, d_values):
    H, E, Dv = n_heads, d_keys, d_values

    # --- K/V projections: once per batch (L axis is "arbitrary"), full-width
    #     matmuls across all heads, results persist in VMEM scratch. ---
    @pl.when(pl.program_id(1) == 0)
    def _project_kv():
        k_in = k_in_ref[0]                                   # [S, d_model] bf16
        v_in = v_in_ref[0]                                   # [S, d_model] bf16
        k_proj_ref[...] = (jnp.dot(k_in, wk_ref[...],
                                   preferred_element_type=jnp.float32)
                           + bk_ref[...]).astype(jnp.bfloat16)   # [S, H*E]
        v_proj_ref[...] = (jnp.dot(v_in, wv_ref[...],
                                   preferred_element_type=jnp.float32)
                           + bv_ref[...]).astype(jnp.bfloat16)   # [S, H*Dv]

    # --- Q projection for this L tile: one wide matmul across all heads.
    #     Scale (1/sqrt(E)) is already folded into wq/bq in the wrapper. ---
    q_in = q_in_ref[0]                                       # [TL, d_model] bf16
    q_proj_ref[...] = (jnp.dot(q_in, wq_ref[...],
                               preferred_element_type=jnp.float32)
                       + bq_ref[...]).astype(jnp.bfloat16)       # [TL, H*E]

    # --- Per-head attention. No carried jnp accumulator: each head writes its
    #     bf16 result into its lane slot of the heads buffer. ---
    for h in range(H):                                       # static unroll; H small
        qh = q_proj_ref[:, h * E:(h + 1) * E]                # [TL, E] bf16
        kh = k_proj_ref[:, h * E:(h + 1) * E]                # [S,  E] bf16
        vh = v_proj_ref[:, h * Dv:(h + 1) * Dv]              # [S, Dv] bf16

        # QK^T as a transposed contraction (no explicit kh.T), f32 accumulate.
        scores = lax.dot_general(qh, kh, (((1,), (1,)), ((), ())),
                                 preferred_element_type=jnp.float32)  # [TL, S]

        # Numerically-stable softmax; exp in bf16 (EUP), denom summed in f32,
        # normalization deferred to the PV result.
        m = jnp.max(scores, axis=-1, keepdims=True)
        p = jnp.exp((scores - m).astype(jnp.bfloat16))        # [TL, S] bf16
        l_sum = jnp.sum(p.astype(jnp.float32), axis=-1, keepdims=True)  # [TL,1] f32

        head = jnp.dot(p, vh, preferred_element_type=jnp.float32)      # [TL, Dv]
        head = head * pl.reciprocal(l_sum, approx=True)

        heads_ref[:, h * Dv:(h + 1) * Dv] = head.astype(jnp.bfloat16)

    # --- Output projection: ONE full-width matmul [TL,H*Dv] x [H*Dv,d_model]. ---
    out_ref[0] = (jnp.dot(heads_ref[...], wo_ref[...],
                          preferred_element_type=jnp.float32)
                  + bo_ref[...]).astype(out_ref.dtype)


def _vmem_limit_bytes(TL, S, d_model, HE, HDv):
    bf = 2
    est = (2 * TL * d_model * bf                       # q block, x2 buffers
           + 2 * 2 * S * d_model * bf                  # k, v blocks, x2 buffers
           + 2 * TL * d_model * 4                      # out block (f32), x2 buffers
           + 2 * (2 * d_model * HE + d_model * HDv + HDv * d_model) * bf  # weights
           + (S * HE + S * HDv + TL * HE + TL * HDv) * bf                 # scratch
           + 6 * TL * S * 4                            # scores / softmax temporaries
           + (4 << 20))                                # headroom
    try:
        cap = pltpu.get_tpu_info().vmem_capacity_bytes
    except Exception:
        cap = 64 * 1024 * 1024                         # conservative (v7x-sized)
    return int(min(max(est, 32 * 1024 * 1024), int(cap * 0.75)))


def attention_layer_forward(queries, keys, values, attn_mask, params, n_heads):
    """Pallas equivalent of AttentionLayer.forward. Returns (out, attn=None)."""
    del attn_mask  # TODO(synk): masking not implemented (mask_flag=False path only)
    B, L, d_model = queries.shape
    _, S, _ = keys.shape
    H = n_heads

    # torch nn.Linear stores W as (out, in) -> transpose once in the wrapper.
    wq_t = params["wq"].T                      # (d_model, H*E)
    wk_t = params["wk"].T                      # (d_model, H*E)
    wv_t = params["wv"].T                      # (d_model, H*Dv)
    wo_t = params["wo"].T                      # (H*Dv, d_model)

    HE = wq_t.shape[1]
    HDv = wv_t.shape[1]
    E = HE // H
    Dv = HDv // H
    scale = 1.0 / math.sqrt(E)

    # Fold the softmax scale into the Q projection (removes a [TL,S] VPU mul
    # per head per grid step); cast weights to bf16 for the MXU.
    wq_b = (wq_t * scale).astype(jnp.bfloat16)
    bq_b = (params["bq"] * scale).reshape(1, HE).astype(jnp.float32)
    wk_b = wk_t.astype(jnp.bfloat16)
    bk_b = params["bk"].reshape(1, HE).astype(jnp.float32)
    wv_b = wv_t.astype(jnp.bfloat16)
    bv_b = params["bv"].reshape(1, HDv).astype(jnp.float32)
    wo_b = wo_t.astype(jnp.bfloat16)
    bo_b = params["bo"].reshape(1, d_model).astype(jnp.float32)

    # bf16 activations at the boundary -> half the HBM->VMEM DMA traffic.
    q_bf = queries.astype(jnp.bfloat16)
    k_bf = keys.astype(jnp.bfloat16)
    v_bf = values.astype(jnp.bfloat16)

    # --- L tiling: 256 fills the 256-wide v6e/v7x MXU; pad (never one giant
    #     unaligned tile) so the pipeline / VMEM budget stay intact. ---
    if L % 256 == 0:
        TL, Lp = 256, L
    elif L % 128 == 0:
        TL, Lp = 128, L
    elif L <= 512:
        TL, Lp = L, L                          # single full-L block (allowed)
    else:
        Lp = 128 * pl.cdiv(L, 128)
        TL = 128
        q_bf = jnp.pad(q_bf, ((0, 0), (0, Lp - L), (0, 0)))
    n_l = Lp // TL

    kernel = partial(_attention_layer_kernel, n_heads=H, d_keys=E, d_values=Dv)

    def const_spec(a):
        return pl.BlockSpec(a.shape, lambda b, l, n=a.ndim: (0,) * n)

    vmem_limit = _vmem_limit_bytes(TL, S, d_model, HE, HDv)

    out = pl.pallas_call(
        kernel,
        out_shape=jax.ShapeDtypeStruct((B, Lp, d_model), jnp.float32),
        grid_spec=pltpu.PrefetchScalarGridSpec(
            num_scalar_prefetch=0,
            grid=(B, n_l),
            in_specs=[
                pl.BlockSpec((1, TL, d_model), lambda b, l: (b, l, 0)),  # queries (L-tiled)
                pl.BlockSpec((1, S, d_model), lambda b, l: (b, 0, 0)),   # keys   (resident over L)
                pl.BlockSpec((1, S, d_model), lambda b, l: (b, 0, 0)),   # values (resident over L)
                const_spec(wq_b), const_spec(bq_b),
                const_spec(wk_b), const_spec(bk_b),
                const_spec(wv_b), const_spec(bv_b),
                const_spec(wo_b), const_spec(bo_b),
            ],
            out_specs=pl.BlockSpec((1, TL, d_model), lambda b, l: (b, l, 0)),
            scratch_shapes=[
                pltpu.VMEM((S, HE), jnp.bfloat16),    # projected K (per batch)
                pltpu.VMEM((S, HDv), jnp.bfloat16),   # projected V (per batch)
                pltpu.VMEM((TL, HE), jnp.bfloat16),   # projected Q (per tile)
                pltpu.VMEM((TL, HDv), jnp.bfloat16),  # per-head outputs (per tile)
            ],
        ),
        compiler_params=pltpu.CompilerParams(
            # L axis must be sequential: K/V scratch computed at l==0 is reused.
            dimension_semantics=("parallel", "arbitrary"),
            vmem_limit_bytes=vmem_limit),
    )(q_bf, k_bf, v_bf, wq_b, bq_b, wk_b, bk_b, wv_b, bv_b, wo_b, bo_b)

    if Lp != L:
        out = out[:, :L]
    return out, None


def _reference_forward(queries, keys, values, params, n_heads):
    """Pure-JAX reference mirroring the PyTorch forward (FullAttention)."""
    B, L, d_model = queries.shape
    _, S, _ = keys.shape
    H = n_heads
    q = queries @ params["wq"].T + params["bq"]
    k = keys @ params["wk"].T + params["bk"]
    v = values @ params["wv"].T + params["bv"]
    E = q.shape[-1] // H
    Dv = v.shape[-1] // H
    q = q.reshape(B, L, H, E)
    k = k.reshape(B, S, H, E)
    v = v.reshape(B, S, H, Dv)
    scores = jnp.einsum("blhe,bshe->bhls", q, k) / math.sqrt(E)
    A = jax.nn.softmax(scores, axis=-1)
    out = jnp.einsum("bhls,bshd->blhd", A, v).reshape(B, L, H * Dv)
    return out @ params["wo"].T + params["bo"]


def init_params(key, d_model, n_heads, d_keys=None, d_values=None):
    d_keys = d_keys or d_model // n_heads
    d_values = d_values or d_model // n_heads
    keys = jax.random.split(key, 8)

    def linear(kw, kb, out_dim, in_dim):
        bound = 1.0 / math.sqrt(in_dim)
        w = jax.random.uniform(kw, (out_dim, in_dim), jnp.float32, -bound, bound)
        b = jax.random.uniform(kb, (out_dim,), jnp.float32, -bound, bound)
        return w, b

    wq, bq = linear(keys[0], keys[1], d_keys * n_heads, d_model)
    wk, bk = linear(keys[2], keys[3], d_keys * n_heads, d_model)
    wv, bv = linear(keys[4], keys[5], d_values * n_heads, d_model)
    wo, bo = linear(keys[6], keys[7], d_model, d_values * n_heads)
    return dict(wq=wq, bq=bq, wk=wk, bk=bk, wv=wv, bv=bv, wo=wo, bo=bo)


if __name__ == "__main__":
    B, L, S = 2, 8, 8
    d_model, n_heads = 32, 4

    root = jax.random.PRNGKey(0)
    kp, kq, kk, kv = jax.random.split(root, 4)
    params = init_params(kp, d_model, n_heads)

    queries = jax.random.normal(kq, (B, L, d_model), jnp.float32)
    keys = jax.random.normal(kk, (B, S, d_model), jnp.float32)
    values = jax.random.normal(kv, (B, S, d_model), jnp.float32)

    out, attn = attention_layer_forward(queries, keys, values, None, params, n_heads)
    out = jax.block_until_ready(out)

    ref = _reference_forward(queries, keys, values, params, n_heads)
    assert out.shape == (B, L, d_model)
    assert attn is None
    # bf16 MXU operands + bf16 exp + approx reciprocal -> slightly looser tolerance.
    assert jnp.allclose(out, ref, atol=5e-2, rtol=5e-2), "mismatch vs reference"

    print("KERNEL_OK")
</pallas_src>

<mosaic_0001>
module attributes {stable_mosaic.version = 11 : i64} {
  func.func @_attention_layer_kernel(%arg0: i32, %arg1: i32, %arg2: memref<1x8x32xbf16, #tpu.memory_space<vmem>>, %arg3: memref<1x8x32xbf16, #tpu.memory_space<vmem>>, %arg4: memref<1x8x32xbf16, #tpu.memory_space<vmem>>, %arg5: memref<32x32xbf16, #tpu.memory_space<vmem>>, %arg6: memref<1x32xf32, #tpu.memory_space<vmem>>, %arg7: memref<32x32xbf16, #tpu.memory_space<vmem>>, %arg8: memref<1x32xf32, #tpu.memory_space<vmem>>, %arg9: memref<32x32xbf16, #tpu.memory_space<vmem>>, %arg10: memref<1x32xf32, #tpu.memory_space<vmem>>, %arg11: memref<32x32xbf16, #tpu.memory_space<vmem>>, %arg12: memref<1x32xf32, #tpu.memory_space<vmem>>, %arg13: memref<1x8x32xf32, #tpu.memory_space<vmem>>, %arg14: memref<8x32xbf16, #tpu.memory_space<vmem>>, %arg15: memref<8x32xbf16, #tpu.memory_space<vmem>>, %arg16: memref<8x32xbf16, #tpu.memory_space<vmem>>, %arg17: memref<8x32xbf16, #tpu.memory_space<vmem>>) attributes {dimension_semantics = [#tpu.dimension_semantics<parallel>, #tpu.dimension_semantics<arbitrary>], iteration_bounds = array<i64: 2, 1>, scalar_prefetch = 0 : i64, scratch_operands = 4 : i64, tpu.core_type = #tpu.core_type<tc>, window_params = [{transform_indices = @transform_0, window_bounds = array<i64: 1, 8, 32>}, {transform_indices = @transform_1, window_bounds = array<i64: 1, 8, 32>}, {transform_indices = @transform_2, window_bounds = array<i64: 1, 8, 32>}, {pipeline_mode = #tpu.pipeline_mode<synchronous>, transform_indices = @transform_3, window_bounds = array<i64: 32, 32>}, {pipeline_mode = #tpu.pipeline_mode<synchronous>, transform_indices = @transform_4, window_bounds = array<i64: 1, 32>}, {pipeline_mode = #tpu.pipeline_mode<synchronous>, transform_indices = @transform_5, window_bounds = array<i64: 32, 32>}, {pipeline_mode = #tpu.pipeline_mode<synchronous>, transform_indices = @transform_6, window_bounds = array<i64: 1, 32>}, {pipeline_mode = #tpu.pipeline_mode<synchronous>, transform_indices = @transform_7, window_bounds = array<i64: 32, 32>}, {pipeline_mode = #tpu.pipeline_mode<synchronous>, transform_indices = @transform_8, window_bounds = array<i64: 1, 32>}, {pipeline_mode = #tpu.pipeline_mode<synchronous>, transform_indices = @transform_9, window_bounds = array<i64: 32, 32>}, {pipeline_mode = #tpu.pipeline_mode<synchronous>, transform_indices = @transform_10, window_bounds = array<i64: 1, 32>}, {transform_indices = @transform_11, window_bounds = array<i64: 1, 8, 32>}]} {
    %c0_i32 = arith.constant 0 : i32
    %0 = arith.cmpi eq, %arg1, %c0_i32 : i32
    %1 = arith.extui %0 : i1 to i32
    %c0_i32_0 = arith.constant 0 : i32
    %2 = arith.cmpi ne, %1, %c0_i32_0 : i32
    scf.if %2 {
      %c0_64 = arith.constant 0 : index
      %c0_65 = arith.constant 0 : index
      %c0_66 = arith.constant 0 : index
      %97 = vector.load %arg3[%c0_64, %c0_65, %c0_66] : memref<1x8x32xbf16, #tpu.memory_space<vmem>>, vector<1x8x32xbf16>
      %98 = vector.shape_cast %97 : vector<1x8x32xbf16> to vector<8x32xbf16>
      %c0_67 = arith.constant 0 : index
      %c0_68 = arith.constant 0 : index
      %c0_69 = arith.constant 0 : index
      %99 = vector.load %arg4[%c0_67, %c0_68, %c0_69] : memref<1x8x32xbf16, #tpu.memory_space<vmem>>, vector<1x8x32xbf16>
      %100 = vector.shape_cast %99 : vector<1x8x32xbf16> to vector<8x32xbf16>
      %c0_70 = arith.constant 0 : index
      %c0_71 = arith.constant 0 : index
      %101 = vector.load %arg7[%c0_70, %c0_71] : memref<32x32xbf16, #tpu.memory_space<vmem>>, vector<32x32xbf16>
      %cst_72 = arith.constant dense<0.000000e+00> : vector<8x32xf32>
      %102 = tpu.matmul %98, %101, %cst_72 {dimension_numbers = #tpu.dot_dimension_numbers<[1], [0], [0], [1], [0, 0, 1, 1], [], []>} : vector<8x32xbf16>, vector<32x32xbf16>, vector<8x32xf32> -> vector<8x32xf32>
      %c0_73 = arith.constant 0 : index
      %c0_74 = arith.constant 0 : index
      %103 = vector.load %arg8[%c0_73, %c0_74] : memref<1x32xf32, #tpu.memory_space<vmem>>, vector<1x32xf32>
      %104 = vector.broadcast %103 : vector<1x32xf32> to vector<8x32xf32>
      %105 = arith.addf %102, %104 : vector<8x32xf32>
      %106 = arith.truncf %105 : vector<8x32xf32> to vector<8x32xbf16>
      %c0_75 = arith.constant 0 : index
      %c0_76 = arith.constant 0 : index
      %107 = vector.load %arg14[%c0_75, %c0_76] : memref<8x32xbf16, #tpu.memory_space<vmem>>, vector<8x32xbf16>
      tpu.vector_store %arg14[%c0_75, %c0_76], %106 {strides = array<i32>} : memref<8x32xbf16, #tpu.memory_space<vmem>>, vector<8x32xbf16>,
      %c0_77 = arith.constant 0 : index
      %c0_78 = arith.constant 0 : index
      %108 = vector.load %arg9[%c0_77, %c0_78] : memref<32x32xbf16, #tpu.memory_space<vmem>>, vector<32x32xbf16>
      %cst_79 = arith.constant dense<0.000000e+00> : vector<8x32xf32>
      %109 = tpu.matmul %100, %108, %cst_79 {dimension_numbers = #tpu.dot_dimension_numbers<[1], [0], [0], [1], [0, 0, 1, 1], [], []>} : vector<8x32xbf16>, vector<32x32xbf16>, vector<8x32xf32> -> vector<8x32xf32>
      %c0_80 = arith.constant 0 : index
      %c0_81 = arith.constant 0 : index
      %110 = vector.load %arg10[%c0_80, %c0_81] : memref<1x32xf32, #tpu.memory_space<vmem>>, vector<1x32xf32>
      %111 = vector.broadcast %110 : vector<1x32xf32> to vector<8x32xf32>
      %112 = arith.addf %109, %111 : vector<8x32xf32>
      %113 = arith.truncf %112 : vector<8x32xf32> to vector<8x32xbf16>
      %c0_82 = arith.constant 0 : index
      %c0_83 = arith.constant 0 : index
      %114 = vector.load %arg15[%c0_82, %c0_83] : memref<8x32xbf16, #tpu.memory_space<vmem>>, vector<8x32xbf16>
      tpu.vector_store %arg15[%c0_82, %c0_83], %113 {strides = array<i32>} : memref<8x32xbf16, #tpu.memory_space<vmem>>, vector<8x32xbf16>,
    } else {
    }
    %c0 = arith.constant 0 : index
    %c0_1 = arith.constant 0 : index
    %c0_2 = arith.constant 0 : index
    %3 = vector.load %arg2[%c0, %c0_1, %c0_2] : memref<1x8x32xbf16, #tpu.memory_space<vmem>>, vector<1x8x32xbf16>
    %4 = vector.shape_cast %3 : vector<1x8x32xbf16> to vector<8x32xbf16>
    %c0_3 = arith.constant 0 : index
    %c0_4 = arith.constant 0 : index
    %5 = vector.load %arg5[%c0_3, %c0_4] : memref<32x32xbf16, #tpu.memory_space<vmem>>, vector<32x32xbf16>
    %cst = arith.constant dense<0.000000e+00> : vector<8x32xf32>
    %6 = tpu.matmul %4, %5, %cst {dimension_numbers = #tpu.dot_dimension_numbers<[1], [0], [0], [1], [0, 0, 1, 1], [], []>} : vector<8x32xbf16>, vector<32x32xbf16>, vector<8x32xf32> -> vector<8x32xf32>
    %c0_5 = arith.constant 0 : index
    %c0_6 = arith.constant 0 : index
    %7 = vector.load %arg6[%c0_5, %c0_6] : memref<1x32xf32, #tpu.memory_space<vmem>>, vector<1x32xf32>
    %8 = vector.broadcast %7 : vector<1x32xf32> to vector<8x32xf32>
    %9 = arith.addf %6, %8 : vector<8x32xf32>
    %10 = arith.truncf %9 : vector<8x32xf32> to vector<8x32xbf16>
    %c0_7 = arith.constant 0 : index
    %c0_8 = arith.constant 0 : index
    %11 = vector.load %arg16[%c0_7, %c0_8] : memref<8x32xbf16, #tpu.memory_space<vmem>>, vector<8x32xbf16>
    tpu.vector_store %arg16[%c0_7, %c0_8], %10 {strides = array<i32>} : memref<8x32xbf16, #tpu.memory_space<vmem>>, vector<8x32xbf16>,
    %c0_9 = arith.constant 0 : index
    %c0_10 = arith.constant 0 : index
    %12 = vector.load %arg16[%c0_9, %c0_10] : memref<8x32xbf16, #tpu.memory_space<vmem>>, vector<8x8xbf16>
    %c0_11 = arith.constant 0 : index
    %c0_12 = arith.constant 0 : index
    %13 = vector.load %arg14[%c0_11, %c0_12] : memref<8x32xbf16, #tpu.memory_space<vmem>>, vector<8x8xbf16>
    %c0_13 = arith.constant 0 : index
    %c0_14 = arith.constant 0 : index
    %14 = vector.load %arg15[%c0_13, %c0_14] : memref<8x32xbf16, #tpu.memory_space<vmem>>, vector<8x8xbf16>
    %cst_15 = arith.constant dense<0.000000e+00> : vector<8x8xf32>
    %15 = tpu.matmul %12, %13, %cst_15 {dimension_numbers = #tpu.dot_dimension_numbers<[1], [1], [0], [0], [0, 0, 1, 0], [], []>} : vector<8x8xbf16>, vector<8x8xbf16>, vector<8x8xf32> -> vector<8x8xf32>
    %cst_16 = arith.constant dense<0xFF800000> : vector<8xf32>
    %16 = vector.multi_reduction <maximumf>, %15, %cst_16 [1] : vector<8x8xf32> to vector<8xf32>
    %17 = vector.shape_cast %16 : vector<8xf32> to vector<8x1xf32>
    %18 = vector.broadcast %17 : vector<8x1xf32> to vector<8x8xf32>
    %19 = arith.subf %15, %18 : vector<8x8xf32>
    %20 = arith.truncf %19 : vector<8x8xf32> to vector<8x8xbf16>
    %21 = math.exp %20 : vector<8x8xbf16>
    %22 = arith.extf %21 : vector<8x8xbf16> to vector<8x8xf32>
    %cst_17 = arith.constant dense<0.000000e+00> : vector<8xf32>
    %23 = vector.multi_reduction <add>, %22, %cst_17 [1] : vector<8x8xf32> to vector<8xf32>
    %24 = vector.shape_cast %23 : vector<8xf32> to vector<8x1xf32>
    %cst_18 = arith.constant dense<0.000000e+00> : vector<8x8xf32>
    %25 = tpu.matmul %21, %14, %cst_18 {dimension_numbers = #tpu.dot_dimension_numbers<[1], [0], [0], [1], [0, 0, 1, 1], [], []>} : vector<8x8xbf16>, vector<8x8xbf16>, vector<8x8xf32> -> vector<8x8xf32>
    %26 = tpu.reciprocal %24 {approx = true} : vector<8x1xf32> -> vector<8x1xf32>
    %27 = vector.broadcast %26 : vector<8x1xf32> to vector<8x8xf32>
    %28 = arith.mulf %25, %27 : vector<8x8xf32>
    %29 = arith.truncf %28 : vector<8x8xf32> to vector<8x8xbf16>
    %c0_19 = arith.constant 0 : index
    %c0_20 = arith.constant 0 : index
    %30 = vector.load %arg17[%c0_19, %c0_20] : memref<8x32xbf16, #tpu.memory_space<vmem>>, vector<8x8xbf16>
    tpu.vector_store %arg17[%c0_19, %c0_20], %29 {strides = array<i32>} : memref<8x32xbf16, #tpu.memory_space<vmem>>, vector<8x8xbf16>,
    %c0_21 = arith.constant 0 : index
    %c8 = arith.constant 8 : index
    %31 = vector.load %arg16[%c0_21, %c8] : memref<8x32xbf16, #tpu.memory_space<vmem>>, vector<8x8xbf16>
    %c0_22 = arith.constant 0 : index
    %c8_23 = arith.constant 8 : index
    %32 = vector.load %arg14[%c0_22, %c8_23] : memref<8x32xbf16, #tpu.memory_space<vmem>>, vector<8x8xbf16>
    %c0_24 = arith.constant 0 : index
    %c8_25 = arith.constant 8 : index
    %33 = vector.load %arg15[%c0_24, %c8_25] : memref<8x32xbf16, #tpu.memory_space<vmem>>, vector<8x8xbf16>
    %cst_26 = arith.constant dense<0.000000e+00> : vector<8x8xf32>
    %34 = tpu.matmul %31, %32, %cst_26 {dimension_numbers = #tpu.dot_dimension_numbers<[1], [1], [0], [0], [0, 0, 1, 0], [], []>} : vector<8x8xbf16>, vector<8x8xbf16>, vector<8x8xf32> -> vector<8x8xf32>
    %cst_27 = arith.constant dense<0xFF800000> : vector<8xf32>
    %35 = vector.multi_reduction <maximumf>, %34, %cst_27 [1] : vector<8x8xf32> to vector<8xf32>
    %36 = vector.shape_cast %35 : vector<8xf32> to vector<8x1xf32>
    %37 = vector.broadcast %36 : vector<8x1xf32> to vector<8x8xf32>
    %38 = arith.subf %34, %37 : vector<8x8xf32>
    %39 = arith.truncf %38 : vector<8x8xf32> to vector<8x8xbf16>
    %40 = math.exp %39 : vector<8x8xbf16>
    %41 = arith.extf %40 : vector<8x8xbf16> to vector<8x8xf32>
    %cst_28 = arith.constant dense<0.000000e+00> : vector<8xf32>
    %42 = vector.multi_reduction <add>, %41, %cst_28 [1] : vector<8x8xf32> to vector<8xf32>
    %43 = vector.shape_cast %42 : vector<8xf32> to vector<8x1xf32>
    %cst_29 = arith.constant dense<0.000000e+00> : vector<8x8xf32>
    %44 = tpu.matmul %40, %33, %cst_29 {dimension_numbers = #tpu.dot_dimension_numbers<[1], [0], [0], [1], [0, 0, 1, 1], [], []>} : vector<8x8xbf16>, vector<8x8xbf16>, vector<8x8xf32> -> vector<8x8xf32>
    %45 = tpu.reciprocal %43 {approx = true} : vector<8x1xf32> -> vector<8x1xf32>
    %46 = vector.broadcast %45 : vector<8x1xf32> to vector<8x8xf32>
    %47 = arith.mulf %44, %46 : vector<8x8xf32>
    %48 = arith.truncf %47 : vector<8x8xf32> to vector<8x8xbf16>
    %c0_30 = arith.constant 0 : index
    %c8_31 = arith.constant 8 : index
    %49 = vector.load %arg17[%c0_30, %c8_31] : memref<8x32xbf16, #tpu.memory_space<vmem>>, vector<8x8xbf16>
    tpu.vector_store %arg17[%c0_30, %c8_31], %48 {strides = array<i32>} : memref<8x32xbf16, #tpu.memory_space<vmem>>, vector<8x8xbf16>,
    %c0_32 = arith.constant 0 : index
    %c16 = arith.constant 16 : index
    %50 = vector.load %arg16[%c0_32, %c16] : memref<8x32xbf16, #tpu.memory_space<vmem>>, vector<8x8xbf16>
    %c0_33 = arith.constant 0 : index
    %c16_34 = arith.constant 16 : index
    %51 = vector.load %arg14[%c0_33, %c16_34] : memref<8x32xbf16, #tpu.memory_space<vmem>>, vector<8x8xbf16>
    %c0_35 = arith.constant 0 : index
    %c16_36 = arith.constant 16 : index
    %52 = vector.load %arg15[%c0_35, %c16_36] : memref<8x32xbf16, #tpu.memory_space<vmem>>, vector<8x8xbf16>
    %cst_37 = arith.constant dense<0.000000e+00> : vector<8x8xf32>
    %53 = tpu.matmul %50, %51, %cst_37 {dimension_numbers = #tpu.dot_dimension_numbers<[1], [1], [0], [0], [0, 0, 1, 0], [], []>} : vector<8x8xbf16>, vector<8x8xbf16>, vector<8x8xf32> -> vector<8x8xf32>
    %cst_38 = arith.constant dense<0xFF800000> : vector<8xf32>
    %54 = vector.multi_reduction <maximumf>, %53, %cst_38 [1] : vector<8x8xf32> to vector<8xf32>
    %55 = vector.shape_cast %54 : vector<8xf32> to vector<8x1xf32>
    %56 = vector.broadcast %55 : vector<8x1xf32> to vector<8x8xf32>
    %57 = arith.subf %53, %56 : vector<8x8xf32>
    %58 = arith.truncf %57 : vector<8x8xf32> to vector<8x8xbf16>
    %59 = math.exp %58 : vector<8x8xbf16>
    %60 = arith.extf %59 : vector<8x8xbf16> to vector<8x8xf32>
    %cst_39 = arith.constant dense<0.000000e+00> : vector<8xf32>
    %61 = vector.multi_reduction <add>, %60, %cst_39 [1] : vector<8x8xf32> to vector<8xf32>
    %62 = vector.shape_cast %61 : vector<8xf32> to vector<8x1xf32>
    %cst_40 = arith.constant dense<0.000000e+00> : vector<8x8xf32>
    %63 = tpu.matmul %59, %52, %cst_40 {dimension_numbers = #tpu.dot_dimension_numbers<[1], [0], [0], [1], [0, 0, 1, 1], [], []>} : vector<8x8xbf16>, vector<8x8xbf16>, vector<8x8xf32> -> vector<8x8xf32>
    %64 = tpu.reciprocal %62 {approx = true} : vector<8x1xf32> -> vector<8x1xf32>
    %65 = vector.broadcast %64 : vector<8x1xf32> to vector<8x8xf32>
    %66 = arith.mulf %63, %65 : vector<8x8xf32>
    %67 = arith.truncf %66 : vector<8x8xf32> to vector<8x8xbf16>
    %c0_41 = arith.constant 0 : index
    %c16_42 = arith.constant 16 : index
    %68 = vector.load %arg17[%c0_41, %c16_42] : memref<8x32xbf16, #tpu.memory_space<vmem>>, vector<8x8xbf16>
    tpu.vector_store %arg17[%c0_41, %c16_42], %67 {strides = array<i32>} : memref<8x32xbf16, #tpu.memory_space<vmem>>, vector<8x8xbf16>,
    %c0_43 = arith.constant 0 : index
    %c24 = arith.constant 24 : index
    %69 = vector.load %arg16[%c0_43, %c24] : memref<8x32xbf16, #tpu.memory_space<vmem>>, vector<8x8xbf16>
    %c0_44 = arith.constant 0 : index
    %c24_45 = arith.constant 24 : index
    %70 = vector.load %arg14[%c0_44, %c24_45] : memref<8x32xbf16, #tpu.memory_space<vmem>>, vector<8x8xbf16>
    %c0_46 = arith.constant 0 : index
    %c24_47 = arith.constant 24 : index
    %71 = vector.load %arg15[%c0_46, %c24_47] : memref<8x32xbf16, #tpu.memory_space<vmem>>, vector<8x8xbf16>
    %cst_48 = arith.constant dense<0.000000e+00> : vector<8x8xf32>
    %72 = tpu.matmul %69, %70, %cst_48 {dimension_numbers = #tpu.dot_dimension_numbers<[1], [1], [0], [0], [0, 0, 1, 0], [], []>} : vector<8x8xbf16>, vector<8x8xbf16>, vector<8x8xf32> -> vector<8x8xf32>
    %cst_49 = arith.constant dense<0xFF800000> : vector<8xf32>
    %73 = vector.multi_reduction <maximumf>, %72, %cst_49 [1] : vector<8x8xf32> to vector<8xf32>
    %74 = vector.shape_cast %73 : vector<8xf32> to vector<8x1xf32>
    %75 = vector.broadcast %74 : vector<8x1xf32> to vector<8x8xf32>
    %76 = arith.subf %72, %75 : vector<8x8xf32>
    %77 = arith.truncf %76 : vector<8x8xf32> to vector<8x8xbf16>
    %78 = math.exp %77 : vector<8x8xbf16>
    %79 = arith.extf %78 : vector<8x8xbf16> to vector<8x8xf32>
    %cst_50 = arith.constant dense<0.000000e+00> : vector<8xf32>
    %80 = vector.multi_reduction <add>, %79, %cst_50 [1] : vector<8x8xf32> to vector<8xf32>
    %81 = vector.shape_cast %80 : vector<8xf32> to vector<8x1xf32>
    %cst_51 = arith.constant dense<0.000000e+00> : vector<8x8xf32>
    %82 = tpu.matmul %78, %71, %cst_51 {dimension_numbers = #tpu.dot_dimension_numbers<[1], [0], [0], [1], [0, 0, 1, 1], [], []>} : vector<8x8xbf16>, vector<8x8xbf16>, vector<8x8xf32> -> vector<8x8xf32>
    %83 = tpu.reciprocal %81 {approx = true} : vector<8x1xf32> -> vector<8x1xf32>
    %84 = vector.broadcast %83 : vector<8x1xf32> to vector<8x8xf32>
    %85 = arith.mulf %82, %84 : vector<8x8xf32>
    %86 = arith.truncf %85 : vector<8x8xf32> to vector<8x8xbf16>
    %c0_52 = arith.constant 0 : index
    %c24_53 = arith.constant 24 : index
    %87 = vector.load %arg17[%c0_52, %c24_53] : memref<8x32xbf16, #tpu.memory_space<vmem>>, vector<8x8xbf16>
    tpu.vector_store %arg17[%c0_52, %c24_53], %86 {strides = array<i32>} : memref<8x32xbf16, #tpu.memory_space<vmem>>, vector<8x8xbf16>,
    %c0_54 = arith.constant 0 : index
    %c0_55 = arith.constant 0 : index
    %88 = vector.load %arg17[%c0_54, %c0_55] : memref<8x32xbf16, #tpu.memory_space<vmem>>, vector<8x32xbf16>
    %c0_56 = arith.constant 0 : index
    %c0_57 = arith.constant 0 : index
    %89 = vector.load %arg11[%c0_56, %c0_57] : memref<32x32xbf16, #tpu.memory_space<vmem>>, vector<32x32xbf16>
    %cst_58 = arith.constant dense<0.000000e+00> : vector<8x32xf32>
    %90 = tpu.matmul %88, %89, %cst_58 {dimension_numbers = #tpu.dot_dimension_numbers<[1], [0], [0], [1], [0, 0, 1, 1], [], []>} : vector<8x32xbf16>, vector<32x32xbf16>, vector<8x32xf32> -> vector<8x32xf32>
    %c0_59 = arith.constant 0 : index
    %c0_60 = arith.constant 0 : index
    %91 = vector.load %arg12[%c0_59, %c0_60] : memref<1x32xf32, #tpu.memory_space<vmem>>, vector<1x32xf32>
    %92 = vector.broadcast %91 : vector<1x32xf32> to vector<8x32xf32>
    %93 = arith.addf %90, %92 : vector<8x32xf32>
    %c0_61 = arith.constant 0 : index
    %c0_62 = arith.constant 0 : index
    %c0_63 = arith.constant 0 : index
    %94 = vector.load %arg13[%c0_61, %c0_62, %c0_63] : memref<1x8x32xf32, #tpu.memory_space<vmem>>, vector<1x8x32xf32>
    %95 = vector.shape_cast %94 : vector<1x8x32xf32> to vector<8x32xf32>
    %96 = vector.shape_cast %93 : vector<8x32xf32> to vector<1x8x32xf32>
    tpu.vector_store %arg13[%c0_61, %c0_62, %c0_63], %96 {strides = array<i32>} : memref<1x8x32xf32, #tpu.memory_space<vmem>>, vector<1x8x32xf32>,
    return
  }
  func.func @transform_0(%arg0: i32, %arg1: i32) -> (i32, i32, i32) {
    %c0_i32 = arith.constant 0 : i32
    %c0_i32_0 = arith.constant 0 : i32
    return %arg0, %arg1, %c0_i32 : i32, i32, i32
  }
  func.func @transform_1(%arg0: i32, %arg1: i32) -> (i32, i32, i32) {
    %c0_i32 = arith.constant 0 : i32
    %c0_i32_0 = arith.constant 0 : i32
    %c0_i32_1 = arith.constant 0 : i32
    return %arg0, %c0_i32, %c0_i32_0 : i32, i32, i32
  }
  func.func @transform_2(%arg0: i32, %arg1: i32) -> (i32, i32, i32) {
    %c0_i32 = arith.constant 0 : i32
    %c0_i32_0 = arith.constant 0 : i32
    %c0_i32_1 = arith.constant 0 : i32
    return %arg0, %c0_i32, %c0_i32_0 : i32, i32, i32
  }
  func.func @transform_3(%arg0: i32, %arg1: i32) -> (i32, i32) {
    %c0_i32 = arith.constant 0 : i32
    %c0_i32_0 = arith.constant 0 : i32
    %c0_i32_1 = arith.constant 0 : i32
    return %c0_i32, %c0_i32_0 : i32, i32
  }
  func.func @transform_4(%arg0: i32, %arg1: i32) -> (i32, i32) {
    %c0_i32 = arith.constant 0 : i32
    %c0_i32_0 = arith.constant 0 : i32
    %c0_i32_1 = arith.constant 0 : i32
    return %c0_i32, %c0_i32_0 : i32, i32
  }
  func.func @transform_5(%arg0: i32, %arg1: i32) -> (i32, i32) {
    %c0_i32 = arith.constant 0 : i32
    %c0_i32_0 = arith.constant 0 : i32
    %c0_i32_1 = arith.constant 0 : i32
    return %c0_i32, %c0_i32_0 : i32, i32
  }
  func.func @transform_6(%arg0: i32, %arg1: i32) -> (i32, i32) {
    %c0_i32 = arith.constant 0 : i32
    %c0_i32_0 = arith.constant 0 : i32
    %c0_i32_1 = arith.constant 0 : i32
    return %c0_i32, %c0_i32_0 : i32, i32
  }
  func.func @transform_7(%arg0: i32, %arg1: i32) -> (i32, i32) {
    %c0_i32 = arith.constant 0 : i32
    %c0_i32_0 = arith.constant 0 : i32
    %c0_i32_1 = arith.constant 0 : i32
    return %c0_i32, %c0_i32_0 : i32, i32
  }
  func.func @transform_8(%arg0: i32, %arg1: i32) -> (i32, i32) {
    %c0_i32 = arith.constant 0 : i32
    %c0_i32_0 = arith.constant 0 : i32
    %c0_i32_1 = arith.constant 0 : i32
    return %c0_i32, %c0_i32_0 : i32, i32
  }
  func.func @transform_9(%arg0: i32, %arg1: i32) -> (i32, i32) {
    %c0_i32 = arith.constant 0 : i32
    %c0_i32_0 = arith.constant 0 : i32
    %c0_i32_1 = arith.constant 0 : i32
    return %c0_i32, %c0_i32_0 : i32, i32
  }
  func.func @transform_10(%arg0: i32, %arg1: i32) -> (i32, i32) {
    %c0_i32 = arith.constant 0 : i32
    %c0_i32_0 = arith.constant 0 : i32
    %c0_i32_1 = arith.constant 0 : i32
    return %c0_i32, %c0_i32_0 : i32, i32
  }
  func.func @transform_11(%arg0: i32, %arg1: i32) -> (i32, i32, i32) {
    %c0_i32 = arith.constant 0 : i32
    %c0_i32_0 = arith.constant 0 : i32
    return %arg0, %arg1, %c0_i32 : i32, i32, i32
  }
}

</mosaic_0001>

<bundles_post_ra>
// kernel: tpu_custom_call.1
= control target key start
LH: loop header
LB: loop body
LE: loop exit
PB: predicated region body
PF: predicated region fallthrough
CT: control target
= control target key end

     0   :  { %s2705_s0 = inlined_call_operand.hbm [shape: bf16[2,8,32], index: 0, kind: input, shape index: {}]   ;;  %s2706_s1 = inlined_call_operand.hbm [shape: bf16[2,8,32], index: 1, kind: input, shape index: {}]   ;;  %s2707_s2 = inlined_call_operand.hbm [shape: bf16[2,8,32], index: 2, kind: input, shape index: {}]   ;;  %s2708_s3 = inlined_call_operand.hbm [shape: bf16[32,32], index: 3, kind: input, shape index: {}]   ;;  %s2709_s4 = inlined_call_operand.hbm [shape: f32[1,32], index: 4, kind: input, shape index: {}]   ;;  %s2710_s5 = inlined_call_operand.hbm [shape: bf16[32,32], index: 5, kind: input, shape index: {}]   ;;  %s2711_s6 = inlined_call_operand.hbm [shape: f32[1,32], index: 6, kind: input, shape index: {}]   ;;  %s2712_s7 = inlined_call_operand.hbm [shape: bf16[32,32], index: 7, kind: input, shape index: {}]   ;;  %s2713_s8 = inlined_call_operand.hbm [shape: f32[1,32], index: 8, kind: input, shape index: {}]   ;;  %s2714_s9 = inlined_call_operand.vmem [shape: bf16[32,32], index: 9, kind: input, shape index: {}]   ;;  %s2715_s10 = inlined_call_operand.vmem [shape: f32[1,32], index: 10, kind: input, shape index: {}]   ;;  %s2716_s11 = inlined_call_operand.hbm [shape: f32[2,8,32], index: 11, kind: output, shape index: {}]  }
   0x1   :  { %2732 = sst [smem:[#allocation34_spill]] %s2708_s3 }
   0x2   :  { %2733 = sst [smem:[#allocation35_spill]] %s2710_s5 }
   0x3   :  { %2734 = sst [smem:[#allocation36_spill]] %s2712_s7 }
   0x4   :  { %2735 = sst [smem:[#allocation37_spill]] %s2715_s10 }
   0x5   :  { %2736 = sst [smem:[#allocation38_spill]] %s2716_s11 }
   0x6   :  { %16 = vsyncpa [#allocation7], 0 }
   0x7   :  { %18 = vsyncpa [#allocation7 + $0x1], 0 }
   0x8   :  { %19 = vsyncpa [#allocation10], 0 }
   0x9   :  { %21 = vsyncpa [#allocation10 + $0x1], 0 }
   0xa   :  { %22 = vsyncpa [#allocation13], 0 }
   0xb   :  { %23 = vsyncpa [#allocation16], 0 }
   0xc   :  { %24 = vsyncpa [#allocation19], 0 }
   0xd   :  { %25 = vsyncpa [#allocation8], 0 }
   0xe   :  { %27 = vsyncpa [#allocation8 + $0x1], 0  ;;  %s2335_s17 = smov 0   ;;  %s2337_s18 = smov 0  }
   0xf   :  { %s2339_s19 = smov 0   ;;  %s2341_s20 = smov 0  }
  0x10   :  { %s2343_s21 = smov 0   ;;  %s2345_s22 = smov 0  }
  0x11 LB: > { %2737 = sst [smem:[#allocation28_spill]] %s2233_s17  ;;  %s2366_s23 = sadd.s32 4294967295, %s2253_s22   ;;  %s2253_s22 = sphi %s2345_s22, %s33_s22   ;;  %s2249_s21 = sphi %s2343_s21, %s2777_s21   ;;  %s2245_s20 = sphi %s2341_s20, %s2776_s20   ;;  %s2241_s19 = sphi %s2339_s19, %s2780_s19   ;;  %s2237_s18 = sphi %s2337_s18, %s2779_s18   ;;  %s2233_s17 = sphi %s2335_s17, %s2778_s17  }
  0x12   : > { %2738 = sst [smem:[#allocation29_spill]] %s2249_s21  ;;  %p1565_p0 = scmp.ge.s32.totalorder %s2253_s22, 1 }
  0x13   : > { %2739 = sst [smem:[#allocation30_spill]] %s2253_s22  ;;  %p2717_p1 = scmp.eq.s32.totalorder %s2366_s23, 0 }
  0x14   : > { %p326_p2 = scmp.lt.s32.totalorder %s2253_s22, 3  ;;  %s2255_s25 = smov [#allocation12]  }
  0x15   : > { %s338_s26 = sshll.u32 %s2255_s25, 4  ;;  %s2256_s28 = smov [#allocation15]   ;;  %s339_s26 = int_to_ptr.vmem [resolvable:$true] %s338_s26 }
  0x16   : > { %p2371_p3 = pnand %p1565_p0, %p326_p2  ;;  %s362_s29 = sshll.u32 %s2256_s28, 4  ;;  %s363_s29 = int_to_ptr.vmem [resolvable:$true] %s362_s29 }
  0x17   : > { %s2257_s30 = smov [#allocation18]   ;;  %s1928_s14 = scalar_lea.vmem %s339_s26, 256 }
  0x18   : > { %s2740_s24 = scalar_select %p2371_p3, 1, 0 }
  0x19   : > { %p1773_p4 = pneg %p2371_p3  ;;  %s386_s12 = sshll.u32 %s2257_s30, 4  ;;  %s387_s12 = int_to_ptr.vmem [resolvable:$true] %s386_s12 }
  0x1a   : > { %p1929_p8 = scmp.ne.s32.totalorder %s339_s26, %s1928_s14  ;;  %p1936_p11 = scmp.lt.s32.totalorder %s339_s26, %s339_s26 }
  0x1b   : > { %p2380_p6 = pnand %p1773_p4, %p2717_p1  ;;  %p1937_p12 = scmp.lt.s32.totalorder %s1928_s14, %s1928_s14 }
  0x1d   : > { %s2741_s27 = scalar_select %p2380_p6, 1, 0 }
  0x1e   : > { %p2386_p7 = pneg %p2380_p6  ;;  %p1938_p13 = por %p1937_p12, %p1936_p11 }
  0x20   : > { %p1931_p9 = pnand %p1929_p8, %p2386_p7 }
  0x22   : > { %p1932_p10 = pneg %p1931_p9 }
  0x24   : > { %p1939_p0 = pnand %p1938_p13, %p1932_p10 }
  0x26   : > { %1942 = shalt.err (!%p1939_p0)
}
  0x27   : > { %s2258_s15 = smov 64   ;;  %s2259_s16 = smov 4  }
  0x28   : > { %s2743_s3 = sld [smem:[#allocation34_spill]]  ;;  %s1954_s30 = scalar_lea.vmem %s363_s29, 256 }
  0x29   : > { %p1955_p2 = scmp.ne.s32.totalorder %s363_s29, %s1954_s30  ;;  %p1962_p9 = scmp.lt.s32.totalorder %s363_s29, %s363_s29 }
  0x2a   : > { %p1963_p5 = scmp.lt.s32.totalorder %s1954_s30, %s1954_s30 }
  0x2b   : > { %p1957_p4 = pnand %p1955_p2, %p2386_p7 }
  0x2c   : > { %p1964_p1 = por %p1963_p5, %p1962_p9 }
  0x2d   : > { %p1958_p8 = pneg %p1957_p4 }
  0x2e   : > { %1776 = dma.hbm_to_vmem [thread:$0]  (!%p2380_p6), %s2743_s3, 256, %s339_s26, [#allocation13], %s2258_s15, %s2258_s15, %s2259_s16  }
  0x2f   : > { %p1965_p11 = pnand %p1964_p1, %p1958_p8 }
  0x31   : > { %1968 = shalt.err (!%p1965_p11)
}
  0x32   : > { %s2744_s5 = sld [smem:[#allocation35_spill]]  ;;  %s1980_s25 = scalar_lea.vmem %s387_s12, 256 }
  0x33   : > { %p1981_p10 = scmp.ne.s32.totalorder %s387_s12, %s1980_s25  ;;  %p1988_p0 = scmp.lt.s32.totalorder %s387_s12, %s387_s12 }
  0x34   : > { %p1989_p2 = scmp.lt.s32.totalorder %s1980_s25, %s1980_s25 }
  0x35   : > { %p1983_p12 = pnand %p1981_p10, %p2386_p7 }
  0x36   : > { %p1990_p4 = por %p1989_p2, %p1988_p0 }
  0x37   : > { %p1984_p13 = pneg %p1983_p12 }
  0x38   : > { %1782 = dma.hbm_to_vmem [thread:$0]  (!%p2380_p6), %s2744_s5, 256, %s363_s29, [#allocation16], %s2258_s15, %s2258_s15, %s2259_s16  }
  0x39   : > { %p1991_p3 = pnand %p1990_p4, %p1984_p13 }
  0x3b   : > { %1994 = shalt.err (!%p1991_p3)
}
  0x3c   : > { %s2745_s7 = sld [smem:[#allocation36_spill]]  ;;  %s1564_s11 = sadd.s32 4294967294, %s2253_s22  }
  0x3d   : > { %s45_s29 = sadd.s32 1, %s2249_s21  ;;  %s54_s30 = sadd.s32 1, %s2241_s19 }
  0x3e   : > { %p47_p1 = scmp.ge.s32.totalorder %s45_s29, 2  ;;  %p61_p3 = scmp.ne.s32.totalorder %s2241_s19, %s2237_s18 }
  0x3f   : > { %p62_p5 = scmp.eq.s32.totalorder %s2253_s22, 0  ;;  %p67_p8 = scmp.ne.s32.totalorder %s2237_s18, %s2233_s17 }
  0x40   : > { %s2782_s29 = smov (%p47_p1, %s45_s29), 0  ;;  %p2748_p11 = scmp.eq.s32.totalorder %s2366_s23, 0 }
  0x41   : > { %2746 = sst [smem:[#allocation31_spill]] %s2782_s29  ;;  %p2421_p9 = por %p62_p5, %p61_p3 }
  0x42   : > { %1788 = dma.hbm_to_vmem [thread:$0]  (!%p2380_p6), %s2745_s7, 256, %s387_s12, [#allocation19], %s2258_s15, %s2258_s15, %s2259_s16  }
  0x43   : > { %p2427_p10 = por %p2748_p11, %p67_p8  ;;  %s49_s15 = ssub.s32 %s2249_s21, %s2782_s29 }
  0x44   : > { %p313_p12 = scmp.eq.s32.totalorder %s2366_s23, 1  ;;  %p52_p13 = scmp.eq.s32.totalorder %s49_s15, 0 }
  0x45   : > { %s2749_s12 = scalar_select %p2427_p10, 1, 0 }
  0x46   : > { %p319_p0 = scmp.eq.s32.totalorder %s1564_s11, 1  ;;  %p2434_p2 = por %p313_p12, %p61_p3 }
  0x47   : > { %p1812_p4 = scmp.lt.s32.totalorder %s2253_s22, 2  ;;  %s2722_s28 = sand.u32 1, %s2241_s19  }
  0x48   : > { %s2750_s16 = scalar_select %p2434_p2, 1, 0 }
  0x49   : > { %s2440_s25 = scalar_select %p52_p13, %s2241_s19, %s54_s30  }
  0x4a   : > { %p2442_p1 = por %p319_p0, %p67_p8  ;;  %s2449_s3 = sshll.u32 %s2722_s28, 2 }
  0x4b   : > { %2751 = sst [smem:[#allocation32_spill]] %s2440_s25  ;;  %s2452_s5 = sshll.u32 %s2249_s21, 6 }
  0x4c   : > { %s2752_s26 = scalar_select %p2442_p1, 1, 0 }
  0x4d   : > { %p2456_p3 = pnand %p1812_p4, %p2421_p9  ;;  %s436_s30 = sand.u32 1, %s2253_s22  }
  0x4e   : > { %2753 = sst [smem:[#allocation33_spill]] %s2752_s26  ;;  %s445_s29 = scalar_lea.hbm %s2706_s1, %s2452_s5 }
  0x4f   : > { %s440_s25 = scalar_lea.vmem [#allocation9], %s2449_s3  ;;  %s2260_s28 = smov [#allocation14]  }
  0x50   : > { %s447_s26 = sshll.u32 %s440_s25, 4  ;;  %s352_s17 = sshll.u32 %s2260_s28, 4  ;;  %s448_s26 = int_to_ptr.vmem [resolvable:$true] %s447_s26  ;;  %s353_s17 = int_to_ptr.vmem [resolvable:$true] %s352_s17 }
  0x51   : > { %s2466_s21 = scalar_lea.sflag [#allocation10], %s436_s30  ;;  %p2727_p5 = pneg %p2456_p3 }
  0x52   : > { %s2008_s14 = scalar_lea.vmem %s448_s26, 64  ;;  %s2261_s22 = smov [#allocation9]  }
  0x53   : > { %p2009_p8 = scmp.ne.s32.totalorder %s448_s26, %s2008_s14  ;;  %s2013_s10 = sshll.u32 %s2261_s22, 4  ;;  %s2014_s10 = int_to_ptr.vmem [resolvable:$false] %s2013_s10 }
  0x54   : > { %s2015_s7 = scalar_lea.vmem %s2014_s10, 128  ;;  %p2016_p12 = scmp.lt.s32.totalorder %s448_s26, %s2014_s10 }
  0x55   : > { %p2011_p9 = pnand %p2009_p8, %p2727_p5  ;;  %p2017_p13 = scmp.lt.s32.totalorder %s2015_s7, %s2008_s14 }
  0x57   : > { %p2012_p11 = pneg %p2011_p9  ;;  %p2018_p0 = por %p2017_p13, %p2016_p12 }
  0x59   : > { %p2019_p4 = pnand %p2018_p0, %p2012_p11 }
  0x5b   : > { %2022 = shalt.err (!%p2019_p4)
}
  0x5c   : > { %1798 = dma.hbm_to_vmem [thread:$0]  (!%p2456_p3), %s445_s29, 64, %s448_s26, %s2466_s21  }
  0x5d   : > { %s2034_s25 = scalar_lea.vmem %s353_s17, 16  ;;  %s2041_s28 = scalar_lea.vmem %s353_s17, 32 }
  0x5e   : > { %p2035_p1 = scmp.ne.s32.totalorder %s353_s17, %s2034_s25  ;;  %p2042_p5 = scmp.lt.s32.totalorder %s353_s17, %s353_s17 }
  0x5f   : > { %p2043_p2 = scmp.lt.s32.totalorder %s2041_s28, %s2034_s25 }
  0x60   : > { %p2037_p8 = pnand %p2035_p1, %p2386_p7 }
  0x61   : > { %p2044_p10 = por %p2043_p2, %p2042_p5 }
  0x62   : > { %p2038_p9 = pneg %p2037_p8 }
  0x64   : > { %p2045_p6 = pnand %p2044_p10, %p2038_p9 }
  0x66   : > { %2048 = shalt.err (!%p2045_p6)
}
  0x67   : > { %p2755_p11 = scmp.ne.s32.totalorder %s2741_s27, 0  ;;  %s2262_s29 = smov [#allocation17]  }
  0x68   : > { %s376_s26 = sshll.u32 %s2262_s29, 4  ;;  %s2263_s30 = smov [#allocation20]   ;;  %s377_s26 = int_to_ptr.vmem [resolvable:$true] %s376_s26 }
  0x69   : > { %1779 = dma.hbm_to_vmem [thread:$0]  (!%p2755_p11), %s2709_s4, 16, %s353_s17, [#allocation13]  }
  0x6a   : > { %s400_s15 = sshll.u32 %s2263_s30, 4  ;;  %s2060_s14 = scalar_lea.vmem %s377_s26, 16  ;;  %s401_s15 = int_to_ptr.vmem [resolvable:$true] %s400_s15 }
  0x6b   : > { %p2061_p1 = scmp.ne.s32.totalorder %s377_s26, %s2060_s14  ;;  %s2067_s7 = scalar_lea.vmem %s377_s26, 32 }
  0x6c   : > { %p2068_p10 = scmp.lt.s32.totalorder %s377_s26, %s377_s26  ;;  %p2069_p6 = scmp.lt.s32.totalorder %s2067_s7, %s2060_s14 }
  0x6d   : > { %p2063_p12 = pnand %p2061_p1, %p2386_p7 }
  0x6e   : > { %p2070_p2 = por %p2069_p6, %p2068_p10 }
  0x6f   : > { %p2064_p13 = pneg %p2063_p12 }
  0x71   : > { %p2071_p5 = pnand %p2070_p2, %p2064_p13 }
  0x73   : > { %2074 = shalt.err (!%p2071_p5)
}
  0x74   : > { %1785 = dma.hbm_to_vmem [thread:$0]  (!%p2755_p11), %s2711_s6, 16, %s377_s26, [#allocation16]  }
  0x75   : > { %s2086_s28 = scalar_lea.vmem %s401_s15, 16  ;;  %s2093_s10 = scalar_lea.vmem %s401_s15, 32 }
  0x76   : > { %p2087_p0 = scmp.ne.s32.totalorder %s401_s15, %s2086_s28  ;;  %p2094_p9 = scmp.lt.s32.totalorder %s401_s15, %s401_s15 }
  0x77   : > { %p2095_p1 = scmp.lt.s32.totalorder %s2093_s10, %s2086_s28 }
  0x78   : > { %p2089_p4 = pnand %p2087_p0, %p2386_p7 }
  0x79   : > { %p2096_p12 = por %p2095_p1, %p2094_p9 }
  0x7a   : > { %p2090_p8 = pneg %p2089_p4 }
  0x7c   : > { %p2097_p10 = pnand %p2096_p12, %p2090_p8 }
  0x7e   : > { %2100 = shalt.err (!%p2097_p10)
}
  0x7f   : > { %1791 = dma.hbm_to_vmem [thread:$0]  (!%p2755_p11), %s2713_s8, 16, %s401_s15, [#allocation19]  }
  0x80   : > { %s427_s30 = scalar_lea.hbm %s2705_s0, %s2452_s5  ;;  %s421_s14 = scalar_lea.vmem [#allocation6], %s2449_s3 }
  0x81   : > { %s429_s7 = sshll.u32 %s421_s14, 4  ;;  %s463_s27 = scalar_lea.hbm %s2707_s2, %s2452_s5  ;;  %s430_s7 = int_to_ptr.vmem [resolvable:$true] %s429_s7 }
  0x82   : > { %s2756_s28 = sand.u32 1, %s2241_s19   ;;  %s2114_s22 = scalar_lea.vmem %s430_s7, 64 }
  0x83   : > { %s418_s10 = scalar_lea.sflag [#allocation7], %s2756_s28  ;;  %p2115_p7 = scmp.ne.s32.totalorder %s430_s7, %s2114_s22 }
  0x84   : > { %p2757_p13 = pneg %p2456_p3  ;;  %s2264_s15 = smov [#allocation6]  }
  0x85   : > { %s2119_s29 = sshll.u32 %s2264_s15, 4  ;;  %s2120_s29 = int_to_ptr.vmem [resolvable:$false] %s2119_s29 }
  0x86   : > { %p2117_p6 = pnand %p2115_p7, %p2757_p13  ;;  %s2121_s13 = scalar_lea.vmem %s2120_s29, 128 }
  0x87   : > { %p2122_p11 = scmp.lt.s32.totalorder %s430_s7, %s2120_s29  ;;  %p2123_p5 = scmp.lt.s32.totalorder %s2121_s13, %s2114_s22 }
  0x88   : > { %p2118_p2 = pneg %p2117_p6 }
  0x89   : > { %p2124_p0 = por %p2123_p5, %p2122_p11 }
  0x8b   : > { %p2125_p4 = pnand %p2124_p0, %p2118_p2 }
  0x8d   : > { %2128 = shalt.err (!%p2125_p4)
}
  0x8e   : > { %1795 = dma.hbm_to_vmem [thread:$0]  (!%p2456_p3), %s427_s30, 64, %s430_s7, %s418_s10  }
  0x8f   : > { %s458_s26 = scalar_lea.vmem [#allocation11], %s2449_s3  ;;  %p2758_p9 = pmov %p2757_p13 }
  0x90   : > { %s465_s14 = sshll.u32 %s458_s26, 4  ;;  %s2265_s17 = smov [#allocation11]   ;;  %s466_s14 = int_to_ptr.vmem [resolvable:$true] %s465_s14 }
  0x91   : > { %s2142_s25 = scalar_lea.vmem %s466_s14, 64  ;;  %s2147_s28 = sshll.u32 %s2265_s17, 4  ;;  %s2148_s28 = int_to_ptr.vmem [resolvable:$false] %s2147_s28 }
  0x92   : > { %p2143_p8 = scmp.ne.s32.totalorder %s466_s14, %s2142_s25  ;;  %s2149_s22 = scalar_lea.vmem %s2148_s28, 128 }
  0x93   : > { %p2150_p10 = scmp.lt.s32.totalorder %s466_s14, %s2148_s28  ;;  %p2151_p7 = scmp.lt.s32.totalorder %s2149_s22, %s2142_s25 }
  0x94   : > { %p2145_p1 = pnand %p2143_p8, %p2758_p9 }
  0x95   : > { %p2152_p13 = por %p2151_p7, %p2150_p10 }
  0x96   : > { %p2146_p12 = pneg %p2145_p1 }
  0x98   : > { %p2153_p6 = pnand %p2152_p13, %p2146_p12 }
  0x9a   : > { %2156 = shalt.err (!%p2153_p6)
}
  0x9b   : > { %1801 = dma.hbm_to_vmem [thread:$0]  (!%p2456_p3), %s463_s27, 64, %s466_s14, %s2466_s21  }
  0x9c   : > { %p2759_p2 = scmp.ne.s32.totalorder %s2740_s24, 0 }
  0x9d   : > { %s2528_s7 = sand.u32 (!%p2759_p2), 1, %s2237_s18   ;;  %p2760_p11 = scmp.ne.s32.totalorder (!%p2759_p2), %s2749_s12, 0 }
  0x9e   : > { %474 = sbr.rel (%p2759_p2) target bundleno = 1414 (0x586), region = 64  ;;  %s2531_s10 = sshll.u32 (!%p2759_p2), %s2528_s7, 2 }
  0x9f   : > { %s477_s11 = scalar_lea.sflag (!%p2759_p2), [#allocation7], %s2528_s7  ;;  %s480_s15 = scalar_lea.vmem (!%p2759_p2), [#allocation6], %s2531_s10 }
  0xa3   : > { %2208 = dma.done.wait (%p2760_p11), %s477_s11, 64  }
  0xa4   : > { %2210 = vsyncadd (%p2760_p11), %s477_s11, 4294967232  ;;  %s485_s5 = sand.u32 1, %s2366_s23   ;;  %s489_s24 = scalar_lea.vmem [#allocation9], %s2531_s10 }
  0xa5   : > { %s486_s21 = scalar_lea.sflag [#allocation10], %s485_s5 }
  0xa6   : > { %2212 = dma.done.wait (%p2760_p11), %s486_s21, 128  }
  0xa7   : > { %2214 = vsyncadd (%p2760_p11), %s486_s21, 4294967168  ;;  %s498_s27 = scalar_lea.vmem [#allocation11], %s2531_s10  ;;  %p2761_p3 = scmp.eq.s32.totalorder %s2366_s23, 0 }
  0xa9   : > { %2216 = dma.done.wait (%p2761_p3), [#allocation13], 272   ;;  %p2762_p5 = pmov %p2761_p3 }
  0xaa   : > { %p2763_p0 = pmov %p2761_p3 }
  0xab   : > { %2218 = vsyncadd (%p2762_p5), [#allocation13], 4294967024 }
  0xac   : > { %2220 = dma.done.wait (%p2763_p0), [#allocation16], 272   ;;  %p2764_p4 = pmov %p2763_p0 }
  0xad   : > { %p2765_p8 = pmov %p2763_p0 }
  0xae   : > { %2222 = vsyncadd (%p2764_p4), [#allocation16], 4294967024 }
  0xaf   : > { %2224 = dma.done.wait (%p2765_p8), [#allocation19], 272   ;;  %p2766_p9 = pmov %p2763_p0 }
  0xb0   : > { %v2266_v0 = vmov 0.0   ;;  %vm2267_vm0 = vmmov 0   ;;  %v1884_v1 = vld [vmem:[#allocation15 + $0x8] sm:$0xff]   ;;  %v1885_v2 = vld [vmem:[#allocation15] sm:$0xff]   ;;  %vm601_vm1 = vcmask 261120   ;;  %v1886_v4 = vld [vmem:[#allocation12 + $0x8] sm:$0xff]  }
  0xb1   : > { %2226 = vsyncadd (%p2766_p9), [#allocation19], 4294967024  ;;  %1661 = vmatprep.subr.bf16.mxu0 %v2266_v0  ;;  %1665 = vmatprep.mubr.msk.bf16.mxu0 %vm2267_vm0, %v2266_v0  ;;  %v576_v3 = vld [vmem:[%s489_s24] sm:$0xf]  ;;  %v1887_v5 = vld [vmem:[#allocation12] sm:$0xff]   ;;  %vm646_vm2 = vcmask 257024  }
  0xb2   : > { %1669 = vmatprep.subr.bf16.mxu1 %v2266_v0  ;;  %1673 = vmatprep.mubr.msk.bf16.mxu1 %vm2267_vm0, %v2266_v0  ;;  %v716_v6 = vld [vmem:[%s480_s15] sm:$0xf]  ;;  %v577_v9 = vld [vmem:[%s498_s27] sm:$0xf]  ;;  %v1590_v10 = vld [vmem:[#allocation17] ss:$0 sm:$0xff] }
  0xb3   : > { %1662 = vmatpush3.bf16.msra.mxu0 %v1884_v1  ;;  %v1888_v7 = vld [vmem:[#allocation18 + $0x8] sm:$0xff]   ;;  %v1889_v8 = vld [vmem:[#allocation18] sm:$0xff]   ;;  %vm790_vm3 = vcmask 64512   ;;  %s2268_s23 = smov 112   ;;  %s2269_s12 = smov 120   ;;  %vm852_vm4 = vcmask 1043456  }
  0xb4   : > { %1663 = vmatprep.subr.bf16.mxu0 %v2266_v0  ;;  %1670 = vmatpush3.bf16.msra.mxu1 %v1888_v7  ;;  %v1598_v17 = vld [vmem:[#allocation14] ss:$0 sm:$0xff]  ;;  %s2270_s29 = smov 104   ;;  %v1594_v33 = vld [vmem:[#allocation20] ss:$0 sm:$0xff]  ;;  %vm899_vm5 = vcmask 60416  }
  0xb5   : > { %1671 = vmatprep.subr.bf16.mxu1 %v2266_v0  ;;  %s2271_s13 = smov 8   ;;  %s2272_s28 = smov 16   ;;  %vm1032_vm6 = vcmask 126016   ;;  %vm1165_vm7 = vcmask 191616   ;;  %vm1298_vm8 = vcmask 257216  }
  0xb6   : > { %s2273_s22 = smov 24   ;;  %s1589_s3 = sshll.u32 %s2528_s7, 3 }
  0xb7   : > { %1664 = vmatpush3.bf16.msra.mxu0 %v1885_v2  ;;  %s2767_s11 = sld [smem:[#allocation37_spill]]  ;;  %s1627_s15 = sshll.u32 %s2245_s20, 7 }
  0xb8   : > { %1677 = vmatprep.subr.bf16.mxu0 %v2266_v0  ;;  %1672 = vmatpush3.bf16.msra.mxu1 %v1889_v8  ;;  %s570_s5 = scalar_lea.vmem [#allocation21], %s1589_s3  ;;  %p2769_p12 = scmp.ne.s32.totalorder %s2750_s16, 0 }
  0xb9   : > { %1685 = vmatprep.subr.bf16.mxu1 %v2266_v0  ;;  %s1383_s21 = sshll.u32 %s570_s5, 4  ;;  %s2658_s21 = int_to_ptr.vmem [resolvable:$true] %s1383_s21 }
  0xba   : > { %1666 = vmatmul.mubr.msk.bf16.vlgmr.msra.gmra.mxu0 %vm601_vm1, %v576_v3  ;;  %s2157_s20 = scalar_lea.vmem %s2658_s21, 128 }
  0xbb   : > { %1678 = vmatpush3.bf16.msra.mxu0 %v1886_v4  ;;  %1681 = vmatprep.mubr.msk.bf16.mxu0 %vm2267_vm0, %v2266_v0  ;;  %p2158_p1 = scmp.ne.s32.totalorder %s2658_s21, %s2157_s20 }
  0xbc   : > { %1679 = vmatprep.subr.bf16.mxu0 %v2266_v0  ;;  %1674 = vmatmul.mubr.msk.bf16.vlgmr.msra.gmra.mxu1 %vm601_vm1, %v577_v9 }
  0xbd   : > { %1687 = vmatprep.mubr.msk.bf16.mxu1 %vm2267_vm0, %v2266_v0  ;;  %p2159_p10 = pnand %p2158_p1, %p2769_p12 }
  0xbf   : > { %1680 = vmatpush3.bf16.msra.mxu0 %v1887_v5  ;;  %p2160_p7 = pneg %p2159_p10 }
  0xc0   : > { %1691 = vmatprep.subr.bf16.mxu0 %v2266_v0 }
  0xc2   : > { %1682 = vmatmul.mubr.msk.bf16.vlgmr.msra.gmra.mxu0 %vm601_vm1, %v716_v6 }
  0xc3   : > { %1693 = vmatprep.mubr.msk.bf16.mxu0 %vm2267_vm0, %v2266_v0 }
 0x17a   : > { %v639_v11 = vpop.f32.mrf.mxu0 }
 0x17b   : > { %v640_v12 = vadd.f32 %v1590_v10, %v639_v11 }
 0x17c   : > { %v1667_v13 = vpop.f32.mrf.mxu0  ;;  %v708_v34 = vpop.f32.mrf.mxu1 }
 0x17d   : > { %v645_v14 = vpack.c.bf16 %v640_v12, %v640_v12  ;;  %v709_v35 = vadd.f32 %v1594_v33, %v708_v34 }
 0x17e   : > { %v642_v15 = vpop.f32.mrf.mxu0  ;;  %v1675_v36 = vpop.f32.mrf.mxu1 }
 0x17f   : > { %647 = vst.msk [vmem:[#allocation2] sm:$0xf] %vm646_vm2, %v645_v14  ;;  %v714_v37 = vpack.c.bf16 %v709_v35, %v709_v35 }
 0x180   : > { %v1668_v16 = vpop.f32.mrf.mxu0  ;;  %v711_v38 = vpop.f32.mrf.mxu1 }
 0x181   : > { %715 = vst.msk [vmem:[#allocation3] sm:$0xf] %vm646_vm2, %v714_v37 }
 0x182   : > { %v778_v18 = vpop.f32.mrf.mxu0  ;;  %v1676_v39 = vpop.f32.mrf.mxu1 }
 0x183   : > { %v779_v19 = vadd.f32 %v1598_v17, %v778_v18 }
 0x184   : > { %v1683_v20 = vpop.f32.mrf.mxu0 }
 0x185   : > { %v784_v21 = vpack.c.bf16 %v779_v19, %v779_v19 }
 0x186   : > { %v781_v22 = vpop.f32.mrf.mxu0  ;;  %v788_v23 = vld [vmem:[#allocation2] sm:$0xf] }
 0x187   : > { %v1890_v24 = vld [vmem:[#allocation2] ss:$0 sps:$4 sm:$0xff]   ;;  %786 = vst.msk [vmem:[#allocation4] sm:$0xf] %vm646_vm2, %v784_v21  ;;  %v795_v25 = vsel %vm790_vm3, %v788_v23, 0 }
 0x188   : > { %v1891_v26 = vld [vmem:[#allocation2] ss:$0 sps:$4 sm:$0xff]   ;;  %v1684_v27 = vpop.f32.mrf.mxu0  ;;  %1686 = vmatpush3.bf16.xpose.msra.mxu1 %v795_v25  ;;  %1045 = vrot.lane.b32.xlu1 %v1890_v24, %s2268_s23  ;;  %v789_v40 = vld [vmem:[#allocation3] sm:$0xf] }
 0x189   : > { %912 = vrot.lane.b32.xlu0 %v1891_v26, %s2269_s12  ;;  %1697 = vmatprep.subr.bf16.mxu1 %v2266_v0  ;;  %v1895_v32 = vld [vmem:[#allocation2] ss:$0 sps:$4 sm:$0xff]   ;;  %v854_v41 = vsel %vm852_vm4, %v789_v40, 0  ;;  %v1896_v5 = vld [vmem:[#allocation3] ss:$0 sps:$4 sm:$0xff]  }
 0x18a   : > { %1692 = vmatpush3.bf16.msra.mxu0 %v854_v41  ;;  %v1897_v8 = vld [vmem:[#allocation3] ss:$0 sps:$4 sm:$0xff]  }
 0x18b   : > { %1703 = vmatprep.subr.bf16.mxu0 %v2266_v0  ;;  %v1898_v14 = vld [vmem:[#allocation3] ss:$0 sps:$4 sm:$0xff]  }
 0x18e   : > { %v787_v28 = vld [vmem:[#allocation4] sm:$0xf] }
 0x18f   : > { %v1892_v29 = vld [vmem:[#allocation4] ss:$0 sps:$4 sm:$0xff]   ;;  %1688 = vmatmul.mubr.msk.bf16.vlgmr.msra.gmra.mxu1 %vm790_vm3, %v787_v28 }
 0x190   : > { %v1893_v30 = vld [vmem:[#allocation4] ss:$0 sps:$4 sm:$0xff]   ;;  %1040 = vrot.lane.b32.xlu1 %v1892_v29, %s2268_s23  ;;  %1699 = vmatprep.mubr.msk.bf16.mxu1 %vm2267_vm0, %v2266_v0 }
 0x191   : > { %907 = vrot.lane.b32.xlu0 %v1893_v30, %s2269_s12  ;;  %v1894_v31 = vld [vmem:[#allocation4] ss:$0 sps:$4 sm:$0xff]  }
 0x194   : > { %1173 = vrot.lane.b32.xlu1 %v1894_v31, %s2270_s29 }
 0x195   : > { %1178 = vrot.lane.b32.xlu0 %v1895_v32, %s2270_s29 }
 0x1fa   : > { %v1046_v44 = vpop.permute.xlu1 %1045 }
 0x1fb   : > { %v913_v42 = vpop.permute.xlu0 %912  ;;  %v1051_v46 = vsel %vm790_vm3, %v1046_v44, 0 }
 0x1fc   : > { %v918_v43 = vsel %vm790_vm3, %v913_v42, 0 }
 0x1fd   : > { %1698 = vmatpush3.bf16.xpose.msra.mxu1 %v918_v43 }
 0x1fe   : > { %1709 = vmatprep.subr.bf16.mxu1 %v2266_v0 }
 0x202   : > { %v1041_v48 = vpop.permute.xlu1 %1040 }
 0x203   : > { %v908_v45 = vpop.permute.xlu0 %907 }
 0x204   : > { %1700 = vmatmul.mubr.msk.bf16.vlgmr.msra.gmra.mxu1 %vm790_vm3, %v908_v45 }
 0x205   : > { %1710 = vmatpush3.bf16.xpose.msra.mxu1 %v1051_v46  ;;  %1711 = vmatprep.mubr.msk.bf16.mxu1 %vm2267_vm0, %v2266_v0 }
 0x206   : > { %1721 = vmatprep.subr.bf16.mxu1 %v2266_v0  ;;  %v1174_v50 = vpop.permute.xlu1 %1173 }
 0x207   : > { %v1179_v47 = vpop.permute.xlu0 %1178 }
 0x208   : > { %v1184_v49 = vsel %vm790_vm3, %v1179_v47, 0 }
 0x20c   : > { %1712 = vmatmul.mubr.msk.bf16.vlgmr.msra.gmra.mxu1 %vm790_vm3, %v1041_v48 }
 0x20d   : > { %1722 = vmatpush3.bf16.xpose.msra.mxu1 %v1184_v49  ;;  %1723 = vmatprep.mubr.msk.bf16.mxu1 %vm2267_vm0, %v2266_v0 }
 0x20e   : > { %1733 = vmatprep.subr.bf16.mxu1 %v2266_v0 }
 0x214   : > { %1724 = vmatmul.mubr.msk.bf16.vlgmr.msra.gmra.mxu1 %vm790_vm3, %v1174_v50 }
 0x215   : > { %1737 = vmatprep.mubr.msk.bf16.mxu1 %vm2267_vm0, %v2266_v0 }
 0x24f   : > { %v831_v51 = vpop.f32.mrf.mxu1 }
 0x250   : > { %v837_v52 = vsel %vm790_vm3, %v831_v51, -inf }
 0x251   : > { %838 = vmax.xlane.f32.xlu0 %v837_v52  ;;  %v1689_v53 = vpop.f32.mrf.mxu1 }
 0x253   : > { %v834_v54 = vpop.f32.mrf.mxu1 }
 0x255   : > { %v1690_v55 = vpop.f32.mrf.mxu1 }
 0x2c4   : > { %v954_v56 = vpop.f32.mrf.mxu1 }
 0x2c5   : > { %v960_v57 = vsel %vm790_vm3, %v954_v56, -inf }
 0x2c6   : > { %961 = vmax.xlane.f32.xlu1 %v960_v57  ;;  %v1701_v58 = vpop.f32.mrf.mxu1 }
 0x2c8   : > { %v957_v59 = vpop.f32.mrf.mxu1 }
 0x2ca   : > { %v1702_v60 = vpop.f32.mrf.mxu1 }
 0x2cc   : > { %v1087_v61 = vpop.f32.mrf.mxu1 }
 0x2cd   : > { %v1093_v62 = vsel %vm790_vm3, %v1087_v61, -inf }
 0x2ce   : > { %1094 = vmax.xlane.f32.xlu0 %v1093_v62  ;;  %v1713_v63 = vpop.f32.mrf.mxu1 }
 0x2d0   : > { %v1090_v1 = vpop.f32.mrf.mxu1 }
 0x2d2   : > { %v1714_v2 = vpop.f32.mrf.mxu1 }
 0x2d3   : > { %v1899_v2 = vld [vmem:[%s2714_s9 + $0x8] sm:$0xff]  }
 0x2d4   : > { %v1220_v3 = vpop.f32.mrf.mxu1  ;;  %1734 = vmatpush3.bf16.msra.mxu1 %v1899_v2 }
 0x2d5   : > { %v1226_v4 = vsel %vm790_vm3, %v1220_v3, -inf  ;;  %1735 = vmatprep.subr.bf16.mxu1 %v2266_v0 }
 0x2d6   : > { %1227 = vmax.xlane.f32.xlu0 %v1226_v4  ;;  %v1725_v6 = vpop.f32.mrf.mxu1 }
 0x2d7   : > { %975 = vrot.lane.b32.xlu1 %v1896_v5, %s2269_s12  ;;  %v1900_v5 = vld [vmem:[%s2714_s9] sm:$0xff]  }
 0x2d8   : > { %v1223_v7 = vpop.f32.mrf.mxu1  ;;  %1736 = vmatpush3.bf16.msra.mxu1 %v1900_v5 }
 0x2da   : > { %v839_v9 = vpop.xlane.xlu0 %838  ;;  %v1726_v10 = vpop.f32.mrf.mxu1 }
 0x2db   : > { %v840_v11 = vsub.f32 %v831_v51, %v839_v9  ;;  %1241 = vrot.lane.b32.xlu1 %v1897_v8, %s2270_s29  ;;  %s1369_s29 = scalar_lea.sflag [#allocation8], %s2528_s7 }
 0x2dd   : > { %v841_v12 = vpack.c.bf16 %v840_v11, %v840_v11 }
 0x2df   : > { %v843_v13 = vmul.bf16 1069105081, %v841_v12 }
 0x2e1   : > { %1901 = vpow.bf16 %v843_v13 }
 0x2ec   : > { %1108 = vrot.lane.b32.xlu0 %v1898_v14, %s2268_s23  ;;  %s2768_s23 = sld [smem:[#allocation38_spill]] }
 0x2ef   : > { %v1902_v15 = vpop.eup %1901 }
 0x2f0   : > { %1694 = vmatmul.mubr.msk.bf16.vlgmr.msra.gmra.mxu0 %vm790_vm3, %v1902_v15  ;;  %v845_v35 = vunpack.c.l.bf16 %v1902_v15 }
 0x2f1   : > { %1705 = vmatprep.mubr.msk.bf16.mxu0 %vm2267_vm0, %v2266_v0 }
 0x2f2   : > { %v846_v37 = vsel %vm790_vm3, %v845_v35, 0.0  ;;  %s2656_s12 = scalar_lea.hbm %s2768_s23, %s1627_s15 }
 0x34f   : > { %v962_v16 = vpop.xlane.xlu1 %961 }
 0x350   : > { %v963_v17 = vsub.f32 %v954_v56, %v962_v16 }
 0x352   : > { %v964_v18 = vpack.c.bf16 %v963_v17, %v963_v17 }
 0x353   : > { %v976_v19 = vpop.permute.xlu1 %975 }
 0x354   : > { %v966_v20 = vmul.bf16 1069105081, %v964_v18  ;;  %v981_v21 = vsel %vm852_vm4, %v976_v19, 0  ;;  %v1622_v19 = vld [vmem:[%s2767_s11] ss:$0 sm:$0xff] }
 0x355   : > { %1704 = vmatpush3.bf16.msra.mxu0 %v981_v21 }
 0x356   : > { %1903 = vpow.bf16 %v966_v20  ;;  %1715 = vmatprep.subr.bf16.mxu0 %v2266_v0 }
 0x357   : > { %v1095_v22 = vpop.xlane.xlu0 %1094  ;;  %v1242_v36 = vpop.permute.xlu1 %1241 }
 0x358   : > { %v1096_v23 = vsub.f32 %v1087_v61, %v1095_v22  ;;  %v1247_v39 = vsel %vm852_vm4, %v1242_v36, 0 }
 0x35a   : > { %v1097_v24 = vpack.c.bf16 %v1096_v23, %v1096_v23 }
 0x35c   : > { %v1099_v25 = vmul.bf16 1069105081, %v1097_v24 }
 0x35e   : > { %1905 = vpow.bf16 %v1099_v25 }
 0x35f   : > { %v1228_v26 = vpop.xlane.xlu0 %1227 }
 0x360   : > { %v1229_v27 = vsub.f32 %v1220_v3, %v1228_v26 }
 0x362   : > { %v1230_v28 = vpack.c.bf16 %v1229_v27, %v1229_v27 }
 0x363   : > { %v1109_v29 = vpop.permute.xlu0 %1108 }
 0x364   : > { %v1904_v30 = vpop.eup %1903  ;;  %v1232_v31 = vmul.bf16 1069105081, %v1230_v28  ;;  %v1114_v32 = vsel %vm852_vm4, %v1109_v29, 0 }
 0x365   : > { %1706 = vmatmul.mubr.msk.bf16.vlgmr.msra.gmra.mxu0 %vm790_vm3, %v1904_v30  ;;  %v968_v33 = vunpack.c.l.bf16 %v1904_v30 }
 0x366   : > { %1907 = vpow.bf16 %v1232_v31  ;;  %1716 = vmatpush3.bf16.msra.mxu0 %v1114_v32  ;;  %1717 = vmatprep.mubr.msk.bf16.mxu0 %vm2267_vm0, %v2266_v0 }
 0x367   : > { %v969_v34 = vsel %vm790_vm3, %v968_v33, 0.0  ;;  %1727 = vmatprep.subr.bf16.mxu0 %v2266_v0 }
 0x368   : > { %970 = vadd.xlane.f32.xlu1 %v969_v34 }
 0x36c   : > { %v1906_v38 = vpop.eup %1905  ;;  %847 = vadd.xlane.f32.xlu1 %v846_v37 }
 0x36d   : > { %1718 = vmatmul.mubr.msk.bf16.vlgmr.msra.gmra.mxu0 %vm790_vm3, %v1906_v38  ;;  %v1101_v40 = vunpack.c.l.bf16 %v1906_v38 }
 0x36e   : > { %1728 = vmatpush3.bf16.msra.mxu0 %v1247_v39  ;;  %1729 = vmatprep.mubr.msk.bf16.mxu0 %vm2267_vm0, %v2266_v0 }
 0x36f   : > { %v1102_v41 = vsel %vm790_vm3, %v1101_v40, 0.0 }
 0x370   : > { %1103 = vadd.xlane.f32.xlu0 %v1102_v41 }
 0x374   : > { %v1908_v42 = vpop.eup %1907 }
 0x375   : > { %1730 = vmatmul.mubr.msk.bf16.vlgmr.msra.gmra.mxu0 %vm790_vm3, %v1908_v42  ;;  %v1234_v43 = vunpack.c.l.bf16 %v1908_v42 }
 0x377   : > { %v1235_v44 = vsel %vm790_vm3, %v1234_v43, 0.0 }
 0x378   : > { %1236 = vadd.xlane.f32.xlu0 %v1235_v44 }
 0x3b0   : > { %v890_v45 = vpop.f32.mrf.mxu0 }
 0x3b2   : > { %v1695_v46 = vpop.f32.mrf.mxu0 }
 0x3b4   : > { %v893_v47 = vpop.f32.mrf.mxu0 }
 0x3b6   : > { %v1696_v48 = vpop.f32.mrf.mxu0 }
 0x3f1   : > { %v971_v49 = vpop.xlane.xlu1 %970 }
 0x3f5   : > { %v848_v50 = vpop.xlane.xlu1 %847 }
 0x3f6   : > { %1909 = vrcp.f32 %v848_v50 }
 0x3f7   : > { %1911 = vrcp.f32 %v971_v49 }
 0x3f9   : > { %v1104_v54 = vpop.xlane.xlu0 %1103 }
 0x3fa   : > { %1913 = vrcp.f32 %v1104_v54 }
 0x401   : > { %v1237_v56 = vpop.xlane.xlu0 %1236 }
 0x402   : > { %1915 = vrcp.f32 %v1237_v56 }
 0x403   : > { %v1910_v51 = vpop.eup %1909 }
 0x404   : > { %v897_v52 = vmul.f32 %v1910_v51, %v890_v45  ;;  %v1912_v55 = vpop.eup %1911 }
 0x406   : > { %v898_v53 = vpack.c.bf16 %v897_v52, %v897_v52 }
 0x407   : > { %v1914_v63 = vpop.eup %1913 }
 0x408   : > { %900 = vst.msk [vmem:[#allocation5] sm:$0xf] %vm899_vm5, %v898_v53 }
 0x40f   : > { %v1916_v9 = vpop.eup %1915 }
 0x425   : > { %v1017_v57 = vpop.f32.mrf.mxu0 }
 0x426   : > { %v1024_v58 = vmul.f32 %v1912_v55, %v1017_v57 }
 0x427   : > { %v1707_v59 = vpop.f32.mrf.mxu0 }
 0x428   : > { %v1630_v60 = vpack.c.bf16 %v1024_v58, %v1024_v58 }
 0x429   : > { %v1020_v61 = vpop.f32.mrf.mxu0 }
 0x42a   : > { %1029 = vrot.lane.b32.xlu0 %v1630_v60, %s2271_s13  ;;  %s2274_s13 = smov [#allocation21]  }
 0x42b   : > { %v1708_v62 = vpop.f32.mrf.mxu0  ;;  %s2161_s26 = sshll.u32 %s2274_s13, 4  ;;  %s2162_s26 = int_to_ptr.vmem [resolvable:$false] %s2161_s26 }
 0x42c   : > { %s2163_s14 = scalar_lea.vmem %s2162_s26, 256  ;;  %p2164_p13 = scmp.lt.s32.totalorder %s2658_s21, %s2162_s26 }
 0x42d   : > { %v1150_v1 = vpop.f32.mrf.mxu0  ;;  %p2165_p6 = scmp.lt.s32.totalorder %s2163_s14, %s2157_s20 }
 0x42e   : > { %v1157_v3 = vmul.f32 %v1914_v63, %v1150_v1 }
 0x42f   : > { %v1719_v4 = vpop.f32.mrf.mxu0  ;;  %p2166_p2 = por %p2165_p6, %p2164_p13 }
 0x430   : > { %v1631_v6 = vpack.c.bf16 %v1157_v3, %v1157_v3 }
 0x431   : > { %v1153_v7 = vpop.f32.mrf.mxu0  ;;  %p2167_p11 = pnand %p2166_p2, %p2160_p7 }
 0x432   : > { %1162 = vrot.lane.b32.xlu1 %v1631_v6, %s2272_s28 }
 0x433   : > { %v1720_v8 = vpop.f32.mrf.mxu0 }
 0x435   : > { %v1283_v10 = vpop.f32.mrf.mxu0 }
 0x436   : > { %v1290_v11 = vmul.f32 %v1916_v9, %v1283_v10 }
 0x437   : > { %v1731_v12 = vpop.f32.mrf.mxu0 }
 0x438   : > { %v1632_v13 = vpack.c.bf16 %v1290_v11, %v1290_v11 }
 0x439   : > { %v1286_v14 = vpop.f32.mrf.mxu0 }
 0x43a   : > { %1295 = vrot.lane.b32.xlu1 %v1632_v13, %s2273_s22 }
 0x43b   : > { %v1732_v15 = vpop.f32.mrf.mxu0 }
 0x49c   : > { %v1030_v16 = vpop.permute.xlu0 %1029 }
 0x49d   : > { %1033 = vst.msk [vmem:[#allocation5] sm:$0xf] %vm1032_vm6, %v1030_v16 }
 0x4a4   : > { %v1163_v0 = vpop.permute.xlu1 %1162 }
 0x4a5   : > { %1166 = vst.msk [vmem:[#allocation5] sm:$0xf] %vm1165_vm7, %v1163_v0 }
 0x4ac   : > { %v1296_v17 = vpop.permute.xlu1 %1295 }
 0x4ad   : > { %1299 = vst.msk [vmem:[#allocation5] sm:$0xf] %vm1298_vm8, %v1296_v17 }
 0x4b4   : > { %v1300_v18 = vld [vmem:[#allocation5] sm:$0xf] }
 0x4b5   : > { %1738 = vmatmul.mubr.msk.bf16.vlgmr.msra.gmra.mxu1 %vm601_vm1, %v1300_v18 }
 0x575   : > { %v1361_v20 = vpop.f32.mrf.mxu1 }
 0x576   : > { %v1362_v21 = vadd.f32 %v1622_v19, %v1361_v20 }
 0x577   : > { %v1739_v22 = vpop.f32.mrf.mxu1 }
 0x578   : > { %1367 = vst.msk [vmem:[%s570_s5] sm:$0xff] %vm601_vm1, %v1362_v21 }
 0x579   : > { %v1364_v23 = vpop.f32.mrf.mxu1 }
 0x57a   : > { %2170 = shalt.err (!%p2167_p11)
}
 0x57b   : > { %s2171_s25 = scalar_lea.hbm %s2656_s12, 128  ;;  %s2175_s28 = scalar_lea.hbm %s2768_s23, 256 }
 0x57c   : > { %p2172_p3 = scmp.ne.s32.totalorder %s2656_s12, %s2171_s25  ;;  %p2176_p4 = scmp.lt.s32.totalorder %s2656_s12, %s2768_s23 }
 0x57d   : > { %p2177_p8 = scmp.lt.s32.totalorder %s2175_s28, %s2171_s25 }
 0x57e   : > { %p2173_p5 = pnand %p2172_p3, %p2769_p12 }
 0x57f   : > { %p2178_p9 = por %p2177_p8, %p2176_p4 }
 0x580   : > { %p2174_p0 = pneg %p2173_p5 }
 0x582   : > { %p2179_p1 = pnand %p2178_p9, %p2174_p0 }
 0x584   : > { %2182 = shalt.err (!%p2179_p1)
}
 0x585   : > { %1771 = dma.vmem_to_hbm [thread:$0]  (%p2769_p12), %s2658_s21, 128, %s2656_s12, %s1369_s29   ;;  %v1740_v24 = vpop.f32.mrf.mxu1 }
 0x586 PF: > { %s2770_s30 = sld [smem:[#allocation28_spill]] }
 0x587   : > { %s2771_s10 = sld [smem:[#allocation33_spill]] }
 0x588   : > { %s2772_s11 = sld [smem:[#allocation30_spill]] }
 0x58c   : > { %s1395_s15 = sand.u32 1, %s2770_s30  }
 0x58d   : > { %p2773_p10 = scmp.ne.s32.totalorder %s2771_s10, 0  ;;  %s1396_s5 = scalar_lea.sflag [#allocation8], %s1395_s15 }
 0x58e   : > { %p2774_p7 = scmp.ge.s32.totalorder %s2772_s11, 2 }
 0x590   : > { %p1803_p13 = pnand %p2774_p7, %p2773_p10 }
 0x592   : > { %p1804_p6 = pneg %p1803_p13 }
 0x594   : > { %2228 = dma.done.wait (%p1804_p6), %s1396_s5, 128  }
 0x595   : > { %2230 = vsyncadd (%p1804_p6), %s1396_s5, 4294967168  ;;  %s33_s22 = sadd.s32 1, %s2772_s11   ;;  %s2775_s16 = sld [smem:[#allocation32_spill]] }
 0x596   : > { %p30_p2 = scmp.ge.s32.totalorder %s33_s22, 4   ;;  %s2776_s20 = sld [smem:[#allocation29_spill]] }
 0x597   : > { %s2777_s21 = sld [smem:[#allocation31_spill]]  ;;  %s2778_s17 = smov %s2237_s18 }
 0x598   : > { %s2779_s18 = smov %s2241_s19  ;;  %32 = sbr.rel (!%p30_p2) target bundleno = 17 (0x11), region = 161 }
 0x59b   : > { %s2780_s19 = smov %s2775_s16 }
 0x59d   :  { %1401 = vsyncpa [#allocation7], 1 }
 0x59e   :  { %1403 = vsyncpa [#allocation7 + $0x1], 1 }
 0x59f   :  { %1404 = vsyncpa [#allocation10], 1 }
 0x5a0   :  { %1406 = vsyncpa [#allocation10 + $0x1], 1 }
 0x5a1   :  { %1407 = vsyncpa [#allocation13], 1 }
 0x5a2   :  { %1408 = vsyncpa [#allocation16], 1 }
 0x5a3   :  { %1409 = vsyncpa [#allocation19], 1 }
 0x5a4   :  { %1410 = vsyncpa [#allocation8], 1 }
 0x5a5   :  { %1412 = vsyncpa [#allocation8 + $0x1], 1 }

</bundles_post_ra>
